<compile_context>
chip_gen: v5e
topology: v5e:2x2
jax: 0.10.0
libtpu: 0.0.40
codegen_flags: <defaults>
</compile_context>

<pallas_src>
import numpy as np
import jax
import jax.numpy as jnp
from jax.experimental import pallas as pl
from jax.experimental.pallas import tpu as pltpu

# ---- problem sizes (small, deterministic, lane-dense) ----
B = 2        # batch
S = 8        # sequence length
D = 128      # d_model  (multiple of 128 -> unmasked full-width vld/vst)
DFF = 256    # d_ff


def ff_kernel(x_ref, w1_ref, b1_ref, w2_ref, b2_ref, o_ref, acc_ref):
    """One (row_tile, dff_tile) step of Linear -> ReLU -> Linear, f32 accumulate.

    x_ref:  (row_tile, D)       bf16
    w1_ref: (D, dff_tile)       bf16
    b1_ref: (1, dff_tile)       f32
    w2_ref: (dff_tile, D)       bf16
    b2_ref: (1, D)              f32
    o_ref:  (row_tile, D)       out dtype
    acc_ref:(row_tile, D)       f32 VMEM scratch (accumulator over DFF tiles)
    """
    k = pl.program_id(1)

    @pl.when(k == 0)
    def _():
        acc_ref[...] = jnp.zeros_like(acc_ref)

    # Hidden slice for this DFF tile (f32 out of the MXU).
    h = jnp.dot(x_ref[...], w1_ref[...], preferred_element_type=jnp.float32)
    h = jnp.maximum(h + b1_ref[...], 0.0)           # linear1 bias + ReLU (f32)
    # dropout: identity in eval mode (no RNG applied)
    acc_ref[...] += jnp.dot(h.astype(jnp.bfloat16), w2_ref[...],
                            preferred_element_type=jnp.float32)

    @pl.when(k == pl.num_programs(1) - 1)
    def _():
        o_ref[...] = (acc_ref[...] + b2_ref[...]).astype(o_ref.dtype)


def _pick_row_tile(m):
    # Small problems: one block (single grid step, no per-step overhead).
    if m <= 512:
        return m
    # v6e/v7x MXU is 2x256x256 -> prefer 256-multiples; 128 suits v5e (4x128x128).
    for t in (1024, 512, 256, 128):
        if m % t == 0:
            return t
    return m


def _vmem_estimate(row_tile, d, dff_tile, k_steps, out_bytes):
    bf16, f32 = 2, 4
    n_stream = 1 if k_steps == 1 else 2            # buffers for k-streamed blocks
    total = 0
    total += 2 * row_tile * d * bf16               # x (double-buffered over rows)
    total += n_stream * d * dff_tile * bf16        # W1 tile(s)
    total += n_stream * dff_tile * f32             # b1 tile(s)
    total += n_stream * dff_tile * d * bf16        # W2 tile(s)
    total += 1 * d * f32                           # b2 (single-buffered)
    total += 2 * row_tile * d * out_bytes          # output
    total += row_tile * d * f32                    # f32 accumulator scratch
    return total


def feed_forward(x, w1, b1, w2, b2, *, row_tile=None, dff_tile=None,
                 out_dtype=jnp.float32):
    """x: (B, S, D); W1/W2 expected bf16 (persisted outside the hot path);
    b1: (1, DFF) f32; b2: (1, D) f32. Returns (B, S, D) in out_dtype."""
    b_, s_, d_ = x.shape
    dff_ = w1.shape[1]
    m = b_ * s_

    if row_tile is None:
        row_tile = _pick_row_tile(m)
    if dff_tile is None:
        dff_tile = min(512, dff_)
    assert m % row_tile == 0 and dff_ % dff_tile == 0
    assert d_ % 128 == 0 and dff_tile % 128 == 0
    assert row_tile % 8 == 0 or row_tile == m

    # Lane-dense 2-D activation layout; bf16 MXU inputs (f32 accumulation inside).
    # Weight casts are trace-time no-ops when bf16 params are passed in (the
    # intended usage); only the activation is converted here.
    x2 = x.reshape(m, d_).astype(jnp.bfloat16)
    w1b = w1 if w1.dtype == jnp.bfloat16 else w1.astype(jnp.bfloat16)
    w2b = w2 if w2.dtype == jnp.bfloat16 else w2.astype(jnp.bfloat16)
    b1f = b1.astype(jnp.float32)
    b2f = b2.astype(jnp.float32)

    k_steps = dff_ // dff_tile
    # Single-buffer blocks whose index_map never changes.
    single = pl.Buffered(1)

    def spec(shape, idx, *, single_buffer=False):
        if single_buffer:
            return pl.BlockSpec(shape, idx, pipeline_mode=single)
        return pl.BlockSpec(shape, idx)

    vmem_need = _vmem_estimate(row_tile, d_, dff_tile, k_steps,
                               jnp.dtype(out_dtype).itemsize)
    vmem_limit = int(min(56 * 2**20, max(16 * 2**20, 2 * vmem_need)))

    out = pl.pallas_call(
        ff_kernel,
        out_shape=jax.ShapeDtypeStruct((m, d_), out_dtype),
        grid_spec=pltpu.PrefetchScalarGridSpec(
            num_scalar_prefetch=0,
            grid=(m // row_tile, k_steps),               # rows parallel, DFF last
            in_specs=[
                spec((row_tile, d_),   lambda i, k: (i, 0)),                 # x
                spec((d_, dff_tile),   lambda i, k: (0, k),
                     single_buffer=(k_steps == 1)),                          # W1
                spec((1, dff_tile),    lambda i, k: (0, k),
                     single_buffer=(k_steps == 1)),                          # b1
                spec((dff_tile, d_),   lambda i, k: (k, 0),
                     single_buffer=(k_steps == 1)),                          # W2
                spec((1, d_),          lambda i, k: (0, 0),
                     single_buffer=True),                                    # b2
            ],
            out_specs=pl.BlockSpec((row_tile, d_), lambda i, k: (i, 0)),
            scratch_shapes=[pltpu.VMEM((row_tile, d_), jnp.float32)],
        ),
        compiler_params=pltpu.CompilerParams(
            dimension_semantics=("parallel", "arbitrary"),
            vmem_limit_bytes=vmem_limit),
    )(x2, w1b, b1f, w2b, b2f)

    return out.reshape(b_, s_, d_)


if __name__ == "__main__":
    key = jax.random.PRNGKey(0)
    k0, k1, k2, k3, k4 = jax.random.split(key, 5)

    x = jax.random.normal(k0, (B, S, D), jnp.float32)
    w1 = 0.1 * jax.random.normal(k1, (D, DFF), jnp.float32)
    b1 = 0.01 * jax.random.normal(k2, (1, DFF), jnp.float32)
    w2 = 0.1 * jax.random.normal(k3, (DFF, D), jnp.float32)
    b2 = 0.01 * jax.random.normal(k4, (1, D), jnp.float32)

    # Persist MXU-input weights in bf16 ONCE (parameter setup, not the hot path).
    w1_bf16 = jax.device_put(w1.astype(jnp.bfloat16))
    w2_bf16 = jax.device_put(w2.astype(jnp.bfloat16))

    ff = jax.jit(feed_forward)
    out = jax.block_until_ready(ff(x, w1_bf16, b1, w2_bf16, b2))

    # f32 reference of the PyTorch forward (dropout = identity in eval mode).
    ref = jnp.maximum(x @ w1 + b1, 0.0) @ w2 + b2

    assert out.shape == (B, S, D)
    # Tolerance loosened relative to pure-f32 because matmul inputs are bf16
    # (accumulation stays f32).
    np.testing.assert_allclose(np.asarray(out), np.asarray(ref),
                               rtol=2e-2, atol=5e-2)

    print("KERNEL_OK")
</pallas_src>

<mosaic_0001>
module attributes {stable_mosaic.version = 11 : i64} {
  func.func @ff_kernel(%arg0: i32, %arg1: i32, %arg2: memref<16x128xbf16, #tpu.memory_space<vmem>>, %arg3: memref<128x256xbf16, #tpu.memory_space<vmem>>, %arg4: memref<1x256xf32, #tpu.memory_space<vmem>>, %arg5: memref<256x128xbf16, #tpu.memory_space<vmem>>, %arg6: memref<1x128xf32, #tpu.memory_space<vmem>>, %arg7: memref<16x128xf32, #tpu.memory_space<vmem>>, %arg8: memref<16x128xf32, #tpu.memory_space<vmem>>) attributes {dimension_semantics = [#tpu.dimension_semantics<parallel>, #tpu.dimension_semantics<arbitrary>], iteration_bounds = array<i64: 1, 1>, scalar_prefetch = 0 : i64, scratch_operands = 1 : i64, tpu.core_type = #tpu.core_type<tc>, window_params = [{transform_indices = @transform_0, window_bounds = array<i64: 16, 128>}, {pipeline_mode = #tpu.pipeline_mode<synchronous>, transform_indices = @transform_1, window_bounds = array<i64: 128, 256>}, {pipeline_mode = #tpu.pipeline_mode<synchronous>, transform_indices = @transform_2, window_bounds = array<i64: 1, 256>}, {pipeline_mode = #tpu.pipeline_mode<synchronous>, transform_indices = @transform_3, window_bounds = array<i64: 256, 128>}, {pipeline_mode = #tpu.pipeline_mode<synchronous>, transform_indices = @transform_4, window_bounds = array<i64: 1, 128>}, {transform_indices = @transform_5, window_bounds = array<i64: 16, 128>}]} {
    %c0_i32 = arith.constant 0 : i32
    %0 = arith.cmpi eq, %arg1, %c0_i32 : i32
    %1 = arith.extui %0 : i1 to i32
    %c0_i32_0 = arith.constant 0 : i32
    %2 = arith.cmpi ne, %1, %c0_i32_0 : i32
    scf.if %2 {
      %cst_16 = arith.constant 0.000000e+00 : f32
      %20 = vector.broadcast %cst_16 : f32 to vector<16x128xf32>
      %c0_17 = arith.constant 0 : index
      %c0_18 = arith.constant 0 : index
      %21 = vector.load %arg8[%c0_17, %c0_18] : memref<16x128xf32, #tpu.memory_space<vmem>>, vector<16x128xf32>
      tpu.vector_store %arg8[%c0_17, %c0_18], %20 {strides = array<i32>} : memref<16x128xf32, #tpu.memory_space<vmem>>, vector<16x128xf32>,
    } else {
    }
    %c0 = arith.constant 0 : index
    %c0_1 = arith.constant 0 : index
    %3 = vector.load %arg2[%c0, %c0_1] : memref<16x128xbf16, #tpu.memory_space<vmem>>, vector<16x128xbf16>
    %c0_2 = arith.constant 0 : index
    %c0_3 = arith.constant 0 : index
    %4 = vector.load %arg3[%c0_2, %c0_3] : memref<128x256xbf16, #tpu.memory_space<vmem>>, vector<128x256xbf16>
    %cst = arith.constant dense<0.000000e+00> : vector<16x256xf32>
    %5 = tpu.matmul %3, %4, %cst {dimension_numbers = #tpu.dot_dimension_numbers<[1], [0], [0], [1], [0, 0, 1, 1], [], []>} : vector<16x128xbf16>, vector<128x256xbf16>, vector<16x256xf32> -> vector<16x256xf32>
    %c0_4 = arith.constant 0 : index
    %c0_5 = arith.constant 0 : index
    %6 = vector.load %arg4[%c0_4, %c0_5] : memref<1x256xf32, #tpu.memory_space<vmem>>, vector<1x256xf32>
    %7 = vector.broadcast %6 : vector<1x256xf32> to vector<16x256xf32>
    %8 = arith.addf %5, %7 : vector<16x256xf32>
    %cst_6 = arith.constant 0.000000e+00 : f32
    %9 = vector.broadcast %cst_6 : f32 to vector<16x256xf32>
    %10 = arith.maximumf %8, %9 : vector<16x256xf32>
    %c0_7 = arith.constant 0 : index
    %c0_8 = arith.constant 0 : index
    %11 = vector.load %arg8[%c0_7, %c0_8] : memref<16x128xf32, #tpu.memory_space<vmem>>, vector<16x128xf32>
    %12 = arith.truncf %10 : vector<16x256xf32> to vector<16x256xbf16>
    %c0_9 = arith.constant 0 : index
    %c0_10 = arith.constant 0 : index
    %13 = vector.load %arg5[%c0_9, %c0_10] : memref<256x128xbf16, #tpu.memory_space<vmem>>, vector<256x128xbf16>
    %cst_11 = arith.constant dense<0.000000e+00> : vector<16x128xf32>
    %14 = tpu.matmul %12, %13, %cst_11 {dimension_numbers = #tpu.dot_dimension_numbers<[1], [0], [0], [1], [0, 0, 1, 1], [], []>} : vector<16x256xbf16>, vector<256x128xbf16>, vector<16x128xf32> -> vector<16x128xf32>
    %15 = arith.addf %11, %14 : vector<16x128xf32>
    %c0_12 = arith.constant 0 : index
    %c0_13 = arith.constant 0 : index
    %16 = vector.load %arg8[%c0_12, %c0_13] : memref<16x128xf32, #tpu.memory_space<vmem>>, vector<16x128xf32>
    tpu.vector_store %arg8[%c0_12, %c0_13], %15 {strides = array<i32>} : memref<16x128xf32, #tpu.memory_space<vmem>>, vector<16x128xf32>,
    %c0_i32_14 = arith.constant 0 : i32
    %17 = arith.cmpi eq, %arg1, %c0_i32_14 : i32
    %18 = arith.extui %17 : i1 to i32
    %c0_i32_15 = arith.constant 0 : i32
    %19 = arith.cmpi ne, %18, %c0_i32_15 : i32
    scf.if %19 {
      %c0_16 = arith.constant 0 : index
      %c0_17 = arith.constant 0 : index
      %20 = vector.load %arg8[%c0_16, %c0_17] : memref<16x128xf32, #tpu.memory_space<vmem>>, vector<16x128xf32>
      %c0_18 = arith.constant 0 : index
      %c0_19 = arith.constant 0 : index
      %21 = vector.load %arg6[%c0_18, %c0_19] : memref<1x128xf32, #tpu.memory_space<vmem>>, vector<1x128xf32>
      %22 = vector.broadcast %21 : vector<1x128xf32> to vector<16x128xf32>
      %23 = arith.addf %20, %22 : vector<16x128xf32>
      %c0_20 = arith.constant 0 : index
      %c0_21 = arith.constant 0 : index
      %24 = vector.load %arg7[%c0_20, %c0_21] : memref<16x128xf32, #tpu.memory_space<vmem>>, vector<16x128xf32>
      tpu.vector_store %arg7[%c0_20, %c0_21], %23 {strides = array<i32>} : memref<16x128xf32, #tpu.memory_space<vmem>>, vector<16x128xf32>,
    } else {
    }
    return
  }
  func.func @transform_0(%arg0: i32, %arg1: i32) -> (i32, i32) {
    %c0_i32 = arith.constant 0 : i32
    %c0_i32_0 = arith.constant 0 : i32
    return %arg0, %c0_i32 : i32, i32
  }
  func.func @transform_1(%arg0: i32, %arg1: i32) -> (i32, i32) {
    %c0_i32 = arith.constant 0 : i32
    %c0_i32_0 = arith.constant 0 : i32
    return %c0_i32, %arg1 : i32, i32
  }
  func.func @transform_2(%arg0: i32, %arg1: i32) -> (i32, i32) {
    %c0_i32 = arith.constant 0 : i32
    %c0_i32_0 = arith.constant 0 : i32
    return %c0_i32, %arg1 : i32, i32
  }
  func.func @transform_3(%arg0: i32, %arg1: i32) -> (i32, i32) {
    %c0_i32 = arith.constant 0 : i32
    %c0_i32_0 = arith.constant 0 : i32
    return %arg1, %c0_i32 : i32, i32
  }
  func.func @transform_4(%arg0: i32, %arg1: i32) -> (i32, i32) {
    %c0_i32 = arith.constant 0 : i32
    %c0_i32_0 = arith.constant 0 : i32
    %c0_i32_1 = arith.constant 0 : i32
    return %c0_i32, %c0_i32_0 : i32, i32
  }
  func.func @transform_5(%arg0: i32, %arg1: i32) -> (i32, i32) {
    %c0_i32 = arith.constant 0 : i32
    %c0_i32_0 = arith.constant 0 : i32
    return %arg0, %c0_i32 : i32, i32
  }
}

</mosaic_0001>

<bundles_post_ra>
// kernel: feed_forward.1
= control target key start
LH: loop header
LB: loop body
LE: loop exit
PB: predicated region body
PF: predicated region fallthrough
CT: control target
= control target key end

     0   :  { %10 = vsyncpa [#allocation4], 0  ;;  %s710_s0 = inlined_call_operand.vmem [shape: bf16[16,128], index: 0, kind: input, shape index: {}]   ;;  %s711_s1 = inlined_call_operand.hbm [shape: bf16[128,256], index: 1, kind: input, shape index: {}]   ;;  %s712_s2 = inlined_call_operand.vmem [shape: f32[1,256], index: 2, kind: input, shape index: {}]   ;;  %s713_s3 = inlined_call_operand.hbm [shape: bf16[256,128], index: 3, kind: input, shape index: {}]   ;;  %s714_s4 = inlined_call_operand.vmem [shape: f32[1,128], index: 4, kind: input, shape index: {}]   ;;  %s715_s5 = inlined_call_operand.hbm [shape: f32[16,128], index: 5, kind: output, shape index: {}]  }
   0x1   :  { %11 = vsyncpa [#allocation7], 0 }
   0x2   :  { %12 = vsyncpa [#allocation5], 0  ;;  %s19_s20 = sshll.u32 %s711_s1, 4  ;;  %s649_s21 = smov [#allocation3]   ;;  %s20_s20 = int_to_ptr.hbm [resolvable:$true] %s19_s20 }
   0x3   :  { %s21_s22 = sshll.u32 %s649_s21, 4  ;;  %s34_s25 = sshll.u32 %s713_s3, 4  ;;  %s22_s22 = int_to_ptr.vmem [resolvable:$true] %s21_s22  ;;  %s35_s25 = int_to_ptr.hbm [resolvable:$true] %s34_s25 }
   0x4   :  { %s650_s26 = smov 128   ;;  %s651_s27 = smov 8  }
   0x5   :  { %27 = dma.hbm_to_vmem [thread:$0]  %s20_s20, 2048, %s22_s22, [#allocation4], %s650_s26, %s650_s26, %s651_s27  }
   0x6   :  { %s652_s28 = smov [#allocation6]   ;;  %s653_s30 = smov 64  }
   0x7   :  { %s36_s29 = sshll.u32 %s652_s28, 4  ;;  %s654_s1 = smov 4   ;;  %s37_s29 = int_to_ptr.vmem [resolvable:$true] %s36_s29 }
   0x8   :  { %42 = dma.hbm_to_vmem [thread:$0]  %s35_s25, 2048, %s37_s29, [#allocation7], %s653_s30, %s653_s30, %s654_s1  }
   0x9   :  { %643 = dma.done.wait [#allocation4], 2048  }
   0xa   :  { %644 = vsyncadd [#allocation4], 4294965248 }
   0xb   :  { %645 = dma.done.wait [#allocation7], 2048  }
   0xc   :  { %646 = vsyncadd [#allocation7], 4294965248  ;;  %v460_v0 = vld [vmem:[#allocation3 + $0x70] sm:$0xf]  ;;  %v546_v1 = vld [vmem:[#allocation3 + $0x74] sm:$0xf0] }
   0xd   :  { %v545_v2 = vld [vmem:[#allocation3 + $0x74] sm:$0xf]  ;;  %v461_v3 = vor.u32 %v546_v1, %v460_v0  ;;  %v462_v4 = vld [vmem:[#allocation3 + $0x78] sm:$0xf0]  ;;  %v452_v5 = vld [vmem:[#allocation3 + $0x60] sm:$0xf] }
   0xe   :  { %v544_v6 = vld [vmem:[#allocation3 + $0x64] sm:$0xf0]  ;;  %v465_v7 = vor.u32 %v545_v2, %v462_v4  ;;  %v543_v8 = vld [vmem:[#allocation3 + $0x64] sm:$0xf]  ;;  %v454_v9 = vld [vmem:[#allocation3 + $0x68] sm:$0xf0] }
   0xf   :  { %169 = vmatpush.bf16.msra.mxu0 %v461_v3  ;;  %v453_v10 = vor.u32 %v544_v6, %v452_v5  ;;  %v457_v11 = vor.u32 %v543_v8, %v454_v9  ;;  %v444_v12 = vld [vmem:[#allocation3 + $0x50] sm:$0xf]  ;;  %v542_v13 = vld [vmem:[#allocation3 + $0x54] sm:$0xf0]  ;;  %v541_v14 = vld [vmem:[#allocation3 + $0x54] sm:$0xf] }
  0x10   :  { %183 = vmatpush.bf16.msra.mxu1 %v465_v7  ;;  %v446_v15 = vld [vmem:[#allocation3 + $0x58] sm:$0xf0]  ;;  %v445_v16 = vor.u32 %v542_v13, %v444_v12  ;;  %v436_v18 = vld [vmem:[#allocation3 + $0x40] sm:$0xf]  ;;  %v540_v19 = vld [vmem:[#allocation3 + $0x44] sm:$0xf0] }
  0x11   :  { %v449_v17 = vor.u32 %v541_v14, %v446_v15  ;;  %v539_v20 = vld [vmem:[#allocation3 + $0x44] sm:$0xf]  ;;  %v438_v21 = vld [vmem:[#allocation3 + $0x48] sm:$0xf0]  ;;  %v437_v22 = vor.u32 %v540_v19, %v436_v18  ;;  %v554_v23 = vld [vmem:[#allocation6 + $0x38] sm:$0xff]  ;;  %s655_s9 = smov [#allocation8]  }
  0x12   :  { %v562_v24 = vld [vmem:[#allocation6 + $0x78] sm:$0xff]  ;;  %v441_v25 = vor.u32 %v539_v20, %v438_v21  ;;  %v428_v26 = vld [vmem:[#allocation3 + $0x30] sm:$0xf]  ;;  %v537_v28 = vld [vmem:[#allocation3 + $0x34] sm:$0xf]  ;;  %333 = vmatpush.bf16.msra.mxu2 %v554_v23  ;;  %s382_s10 = sshll.u32 %s655_s9, 4  ;;  %s383_s10 = int_to_ptr.vmem [resolvable:$true] %s382_s10 }
  0x13   :  { %170 = vmatpush.bf16.msra.mxu0 %v453_v10  ;;  %v538_v27 = vld [vmem:[#allocation3 + $0x34] sm:$0xf0]  ;;  %v430_v29 = vld [vmem:[#allocation3 + $0x38] sm:$0xf0]  ;;  %347 = vmatpush.bf16.msra.mxu3 %v562_v24  ;;  %v553_v30 = vld [vmem:[#allocation6 + $0x30] sm:$0xff]  ;;  %s384_s13 = sshll.u32 %s715_s5, 4  ;;  %s385_s13 = int_to_ptr.hbm [resolvable:$true] %s384_s13 }
  0x14   :  { %184 = vmatpush.bf16.msra.mxu1 %v457_v11  ;;  %v561_v31 = vld [vmem:[#allocation6 + $0x70] sm:$0xff]  ;;  %v429_v32 = vor.u32 %v538_v27, %v428_v26  ;;  %v433_v33 = vor.u32 %v537_v28, %v430_v29  ;;  %v420_v34 = vld [vmem:[#allocation3 + $0x20] sm:$0xf]  ;;  %v536_v35 = vld [vmem:[#allocation3 + $0x24] sm:$0xf0] }
  0x15   :  { %v535_v36 = vld [vmem:[#allocation3 + $0x24] sm:$0xf]  ;;  %v422_v37 = vld [vmem:[#allocation3 + $0x28] sm:$0xf0]  ;;  %v421_v40 = vor.u32 %v536_v35, %v420_v34  ;;  %v412_v42 = vld [vmem:[#allocation3 + $0x10] sm:$0xf] }
  0x16   :  { %334 = vmatpush.bf16.msra.mxu2 %v553_v30  ;;  %v552_v38 = vld [vmem:[#allocation6 + $0x28] sm:$0xff]  ;;  %v425_v41 = vor.u32 %v535_v36, %v422_v37  ;;  %v534_v43 = vld [vmem:[#allocation3 + $0x14] sm:$0xf0]  ;;  %v533_v44 = vld [vmem:[#allocation3 + $0x14] sm:$0xf] }
  0x17   :  { %171 = vmatpush.bf16.msra.mxu0 %v445_v16  ;;  %348 = vmatpush.bf16.msra.mxu3 %v561_v31  ;;  %v560_v39 = vld [vmem:[#allocation6 + $0x68] sm:$0xff]  ;;  %v414_v45 = vld [vmem:[#allocation3 + $0x18] sm:$0xf0]  ;;  %v551_v46 = vld [vmem:[#allocation6 + $0x20] sm:$0xff]  ;;  %v413_v48 = vor.u32 %v534_v43, %v412_v42 }
  0x18   :  { %185 = vmatpush.bf16.msra.mxu1 %v449_v17  ;;  %v559_v47 = vld [vmem:[#allocation6 + $0x60] sm:$0xff]  ;;  %v417_v49 = vor.u32 %v533_v44, %v414_v45  ;;  %v532_v51 = vld [vmem:[#allocation3 + $0x4] sm:$0xf0]  ;;  %v406_v53 = vld [vmem:[#allocation3 + $0x8] sm:$0xf0] }
  0x19   :  { %v404_v50 = vld [vmem:[#allocation3] sm:$0xf]  ;;  %v531_v52 = vld [vmem:[#allocation3 + $0x4] sm:$0xf]  ;;  %v550_v57 = vld [vmem:[#allocation6 + $0x18] sm:$0xff] }
  0x1a   :  { %335 = vmatpush.bf16.msra.mxu2 %v552_v38  ;;  %v405_v54 = vor.u32 %v532_v51, %v404_v50  ;;  %v409_v55 = vor.u32 %v531_v52, %v406_v53  ;;  %v530_v56 = vld [vmem:[%s710_s0] sm:$0xff]  ;;  %v558_v58 = vld [vmem:[#allocation6 + $0x58] sm:$0xff]  ;;  %v549_v59 = vld [vmem:[#allocation6 + $0x10] sm:$0xff] }
  0x1b   :  { %172 = vmatpush.bf16.msra.mxu0 %v437_v22  ;;  %349 = vmatpush.bf16.msra.mxu3 %v560_v39  ;;  %v557_v60 = vld [vmem:[#allocation6 + $0x50] sm:$0xff]  ;;  %v548_v61 = vld [vmem:[#allocation6 + $0x8] sm:$0xff]  ;;  %v547_v63 = vld [vmem:[#allocation6] sm:$0xff] }
  0x1c   :  { %186 = vmatpush.bf16.msra.mxu1 %v441_v25  ;;  %v556_v62 = vld [vmem:[#allocation6 + $0x48] sm:$0xff]  ;;  %v555_v0 = vld [vmem:[#allocation6 + $0x40] sm:$0xff] }
  0x1d   :  { %v77_v1 = vld [vmem:[%s712_s2] sm:$0x3] }
  0x1e   :  { %336 = vmatpush.bf16.msra.mxu2 %v551_v46  ;;  %v79_v4 = vperm.slane %v77_v1, 0  ;;  %v80_v5 = vperm.slane %v77_v1, 1  ;;  %v570_v19 = vld [vmem:[%s714_s4] ss:$0 sm:$0xff] }
  0x1f   :  { %173 = vmatpush.bf16.msra.mxu0 %v429_v32  ;;  %350 = vmatpush.bf16.msra.mxu3 %v559_v47 }
  0x20   :  { %187 = vmatpush.bf16.msra.mxu1 %v433_v33 }
  0x22   :  { %337 = vmatpush.bf16.msra.mxu2 %v550_v57 }
  0x23   :  { %174 = vmatpush.bf16.msra.mxu0 %v421_v40  ;;  %351 = vmatpush.bf16.msra.mxu3 %v558_v58 }
  0x24   :  { %188 = vmatpush.bf16.msra.mxu1 %v425_v41 }
  0x26   :  { %338 = vmatpush.bf16.msra.mxu2 %v549_v59 }
  0x27   :  { %175 = vmatpush.bf16.msra.mxu0 %v413_v48  ;;  %352 = vmatpush.bf16.msra.mxu3 %v557_v60 }
  0x28   :  { %189 = vmatpush.bf16.msra.mxu1 %v417_v49 }
  0x2a   :  { %339 = vmatpush.bf16.msra.mxu2 %v548_v61 }
  0x2b   :  { %176 = vmatpush.bf16.msra.mxu0 %v405_v54  ;;  %353 = vmatpush.bf16.msra.mxu3 %v556_v62 }
  0x2c   :  { %190 = vmatpush.bf16.msra.mxu1 %v409_v55 }
  0x2e   :  { %177 = vmatmul.bf16.vlgmr.msra.gmra.mxu0 %v530_v56  ;;  %340 = vmatpush.bf16.msra.mxu2 %v547_v63 }
  0x2f   :  { %191 = vmatmul.bf16.vlgmr.msra.gmra.mxu1 %v530_v56  ;;  %354 = vmatpush.bf16.msra.mxu3 %v555_v0 }
  0xab   :  { %v178_v2 = vpop.f32.mrf.mxu0 }
  0xac   :  { %v192_v3 = vpop.f32.mrf.mxu1  ;;  %v179_v6 = vadd.f32 %v178_v2, %v79_v4 }
  0xad   :  { %v193_v7 = vadd.f32 %v192_v3, %v80_v5 }
  0xae   :  { %v197_v12 = vmax.f32 %v179_v6, 0.0 }
  0xaf   :  { %v198_v14 = vmax.f32 %v193_v7, 0.0 }
  0xb3   :  { %v180_v8 = vpop.f32.mrf.mxu0 }
  0xb4   :  { %v181_v9 = vadd.f32 %v180_v8, %v79_v4  ;;  %v194_v10 = vpop.f32.mrf.mxu1 }
  0xb5   :  { %v195_v11 = vadd.f32 %v194_v10, %v80_v5 }
  0xb6   :  { %v199_v13 = vmax.f32 %v181_v9, 0.0 }
  0xb7   :  { %v200_v15 = vmax.f32 %v195_v11, 0.0 }
  0xb8   :  { %v203_v16 = vpack.c.bf16 %v199_v13, %v197_v12 }
  0xb9   :  { %v204_v17 = vpack.c.bf16 %v200_v15, %v198_v14 }
  0xba   :  { %341 = vmatmul.bf16.vlgmr.msra.gmra.mxu2 %v203_v16 }
  0xbb   :  { %355 = vmatmul.bf16.vlgmr.msra.gmra.mxu3 %v204_v17 }
 0x13d   :  { %v342_v18 = vpop.f32.mrf.mxu2 }
 0x13e   :  { %v356_v20 = vpop.f32.mrf.mxu3 }
 0x13f   :  { %v357_v21 = vadd.f32 %v356_v20, %v342_v18 }
 0x141   :  { %v374_v22 = vadd.f32 %v570_v19, %v357_v21 }
 0x143   :  { %376 = vst [vmem:[#allocation8] sm:$0xff] %v374_v22 }
 0x145   :  { %v344_v23 = vpop.f32.mrf.mxu2 }
 0x146   :  { %v358_v24 = vpop.f32.mrf.mxu3 }
 0x147   :  { %v359_v25 = vadd.f32 %v358_v24, %v344_v23 }
 0x149   :  { %v375_v26 = vadd.f32 %v570_v19, %v359_v25 }
 0x14b   :  { %377 = vst [vmem:[#allocation8 + $0x8] sm:$0xff] %v375_v26 }
 0x14c   :  { %390 = dma.vmem_to_hbm [thread:$0]  %s383_s10, 256, %s385_s13, [#allocation5], %s650_s26, %s650_s26, %s651_s27  }
 0x14d   :  { %647 = dma.done.wait [#allocation5], 256  }
 0x14e   :  { %648 = vsyncadd [#allocation5], 4294967040 }
 0x14f   :  { %395 = vsyncpa [#allocation4], 1 }
 0x150   :  { %396 = vsyncpa [#allocation7], 1 }
 0x151   :  { %397 = vsyncpa [#allocation5], 1 }

</bundles_post_ra>
